<compile_context>
chip_gen: v7x
topology: tpu7x:2x2x1
jax: 0.10.0
libtpu: 0.0.40
codegen_flags: <defaults>
</compile_context>

<pallas_src>
import numpy as np
import jax
import jax.numpy as jnp
from jax.experimental import pallas as pl
from jax.experimental.pallas import tpu as pltpu


def _build_inv_tm(def_d: float) -> jnp.ndarray:
    """Deterministic parameter init, identical to the PyTorch __init__."""
    tm = np.array(
        [
            [-np.sin(np.pi / 3), np.cos(np.pi / 3), def_d],
            [0.0, -1.0, def_d],
            [np.sin(np.pi / 3), np.cos(np.pi / 3), def_d],
        ],
        dtype=np.float32,
    )
    return jnp.asarray(np.linalg.inv(tm).astype(np.float32))


def _round_up(x: int, m: int) -> int:
    return ((x + m - 1) // m) * m


# ----------------------------- kernels --------------------------------------


def _omni_kernel_slab(inv_tm_ref, ws_ref, out_ref):
    # inv_tm_ref : (9,) f32 in SMEM (row-major 3x3 inverse transfer matrix)
    # ws_ref     : (3, tile_r, lane) in VMEM (f32/bf16/f16)
    # out_ref    : (3, tile_r, lane) f32 in VMEM
    ws0 = ws_ref[0].astype(jnp.float32)
    ws1 = ws_ref[1].astype(jnp.float32)
    ws2 = ws_ref[2].astype(jnp.float32)
    for i in range(3):
        out_ref[i] = (
            inv_tm_ref[3 * i + 0] * ws0
            + inv_tm_ref[3 * i + 1] * ws1
            + inv_tm_ref[3 * i + 2] * ws2
        )


def _omni_kernel_2d(inv_tm_ref, ws_ref, out_ref):
    # inv_tm_ref : (9,) f32 in SMEM
    # ws_ref     : (3, tile_n) in VMEM (f32/bf16/f16)
    # out_ref    : (3, tile_n) f32 in VMEM
    ws = ws_ref[...].astype(jnp.float32)
    ws0 = ws[0:1, :]
    ws1 = ws[1:2, :]
    ws2 = ws[2:3, :]
    for i in range(3):
        out_ref[i : i + 1, :] = (
            inv_tm_ref[3 * i + 0] * ws0
            + inv_tm_ref[3 * i + 1] * ws1
            + inv_tm_ref[3 * i + 2] * ws2
        )


# ----------------------------- wrapper ---------------------------------------


def omni_transfer_opt(
    inv_tm: jnp.ndarray,
    wheel_speeds: jnp.ndarray,
    *,
    lane: int = 512,            # lane-dense last dim for the slab path (mult of 128)
    sub_tile: int = 256,        # max sublane tile for the slab path
    tile_cols: int = 64 * 1024, # max column tile for the general path
    min_pallas_cols: int = 65536,
    force_pallas: bool = False,
) -> jnp.ndarray:
    """motion_pred = inv_tm @ wheel_speeds, computed in a Pallas TPU kernel."""
    assert inv_tm.shape == (3, 3)
    assert wheel_speeds.ndim == 2 and wheel_speeds.shape[0] == 3
    assert lane % 128 == 0

    n = wheel_speeds.shape[1]
    inv_f32 = inv_tm.astype(jnp.float32)

    if n == 0:
        return jnp.zeros((3, 0), jnp.float32)

    # Small-N dispatch: launch / per-step overhead dwarfs ~24 B/column of
    # useful traffic, plain XLA is strictly faster there.
    if not force_pallas and n < min_pallas_cols:
        return inv_f32 @ wheel_speeds.astype(jnp.float32)

    # Stream narrow floating dtypes natively; everything else upcasts once.
    ws = wheel_speeds
    if ws.dtype not in (jnp.float32, jnp.bfloat16, jnp.float16):
        ws = ws.astype(jnp.float32)
    in_bytes = ws.dtype.itemsize
    sub_mult = 8 * (4 // in_bytes)  # sublane tile: 8 for f32, 16 for bf16/f16

    inv_flat = inv_f32.reshape(9)
    coeff_spec = pl.BlockSpec(memory_space=pltpu.MemorySpace.SMEM)
    cparams = pltpu.CompilerParams(dimension_semantics=("parallel",))
    cost = pl.CostEstimate(
        flops=15 * n,                               # 3 rows x (3 mul + 2 add)
        transcendentals=0,
        bytes_accessed=3 * n * (in_bytes + 4) + 36,  # stream in + f32 out + coeffs
    )

    if n % lane == 0:
        # ---- Fast path: zero-copy reshape to a lane/sublane-dense slab. ----
        r = n // lane
        if r <= sub_mult:
            tile_r = r  # single block; full-dim block size is always legal
        else:
            # Aim for >=4 grid steps (v7x megacore sharding) but cap the block
            # so the pipelined footprint stays a few MiB on every generation.
            tile_r = min(
                _round_up(sub_tile, sub_mult),
                _round_up(pl.cdiv(r, 4), sub_mult),
            )
        block = (3, tile_r, lane)
        out_slab = pl.pallas_call(
            _omni_kernel_slab,
            out_shape=jax.ShapeDtypeStruct((3, r, lane), jnp.float32),
            grid=(pl.cdiv(r, tile_r),),
            in_specs=[coeff_spec, pl.BlockSpec(block, lambda i: (0, i, 0))],
            out_specs=pl.BlockSpec(block, lambda i: (0, i, 0)),
            compiler_params=cparams,
            cost_estimate=cost,
        )(inv_flat, ws.reshape(3, r, lane))
        return out_slab.reshape(3, n)  # free: contiguous

    # ---- General path: ragged last block directly over the (3, N) layout. ----
    if n <= 128:
        tile_n = n  # single full-dim block
    else:
        tile_n = min(
            _round_up(tile_cols, 128),
            _round_up(pl.cdiv(n, 4), 128),
        )
    block = (3, tile_n)
    return pl.pallas_call(
        _omni_kernel_2d,
        out_shape=jax.ShapeDtypeStruct((3, n), jnp.float32),
        grid=(pl.cdiv(n, tile_n),),
        in_specs=[coeff_spec, pl.BlockSpec(block, lambda i: (0, i))],
        out_specs=pl.BlockSpec(block, lambda i: (0, i)),
        compiler_params=cparams,
        cost_estimate=cost,
    )(inv_flat, ws)


if __name__ == "__main__":
    def_d = 0.15  # wheel-to-center distance used to build the transfer matrix
    inv_tm = _build_inv_tm(def_d)

    key = jax.random.PRNGKey(0)
    k1, k2, k3, k4 = jax.random.split(key, 4)

    # 1) Fast slab path, multi-step grid with a ragged last block:
    #    N = 40*128, lane=128 -> R=40, tile_r=16, grid=3 (rows 40..47 masked).
    ws_a = jax.random.normal(k1, (3, 40 * 128), dtype=jnp.float32)
    out_a = jax.block_until_ready(
        omni_transfer_opt(inv_tm, ws_a, lane=128, force_pallas=True)
    )
    np.testing.assert_allclose(
        np.asarray(out_a), np.asarray(inv_tm @ ws_a), rtol=1e-5, atol=1e-5
    )

    # 2) General (ragged-column) path: N = 3000 is not a multiple of 128.
    #    tile_cols=768 -> grid=4, last block has 696 valid columns.
    ws_b = jax.random.normal(k2, (3, 3000), dtype=jnp.float32)
    out_b = jax.block_until_ready(
        omni_transfer_opt(inv_tm, ws_b, tile_cols=768, force_pallas=True)
    )
    np.testing.assert_allclose(
        np.asarray(out_b), np.asarray(inv_tm @ ws_b), rtol=1e-5, atol=1e-5
    )

    # 3) bf16 input streamed natively (cast to f32 inside the kernel).
    ws_c = jax.random.normal(k3, (3, 2048), dtype=jnp.float32).astype(jnp.bfloat16)
    out_c = jax.block_until_ready(
        omni_transfer_opt(inv_tm, ws_c, lane=512, force_pallas=True)
    )
    ref_c = inv_tm @ ws_c.astype(jnp.float32)
    np.testing.assert_allclose(
        np.asarray(out_c), np.asarray(ref_c), rtol=2e-2, atol=2e-2
    )

    # 4) Default small-N dispatch (plain XLA fallback).
    ws_d = jax.random.normal(k4, (3, 100), dtype=jnp.float32)
    out_d = jax.block_until_ready(omni_transfer_opt(inv_tm, ws_d))
    np.testing.assert_allclose(
        np.asarray(out_d), np.asarray(inv_tm @ ws_d), rtol=1e-5, atol=1e-5
    )

    print("KERNEL_OK")
</pallas_src>

<mosaic_0001>
module attributes {stable_mosaic.version = 11 : i64} {
  func.func @_omni_kernel_slab(%arg0: i32, %arg1: memref<9xf32, #tpu.memory_space<smem>>, %arg2: memref<3x16x128xf32, #tpu.memory_space<vmem>>, %arg3: memref<3x16x128xf32, #tpu.memory_space<vmem>>) attributes {dimension_semantics = [#tpu.dimension_semantics<parallel>], iteration_bounds = array<i64: 3>, scalar_prefetch = 0 : i64, scratch_operands = 0 : i64, tpu.core_type = #tpu.core_type<tc>, window_params = [{transform_indices = @transform_0, window_bounds = array<i64: 9>}, {transform_indices = @transform_1, window_bounds = array<i64: 3, 16, 128>}, {transform_indices = @transform_2, window_bounds = array<i64: 3, 16, 128>}]} {
    %c0 = arith.constant 0 : index
    %c0_0 = arith.constant 0 : index
    %c0_1 = arith.constant 0 : index
    %0 = vector.load %arg2[%c0, %c0_0, %c0_1] : memref<3x16x128xf32, #tpu.memory_space<vmem>>, vector<1x16x128xf32>
    %1 = vector.shape_cast %0 : vector<1x16x128xf32> to vector<16x128xf32>
    %c1 = arith.constant 1 : index
    %c0_2 = arith.constant 0 : index
    %c0_3 = arith.constant 0 : index
    %2 = vector.load %arg2[%c1, %c0_2, %c0_3] : memref<3x16x128xf32, #tpu.memory_space<vmem>>, vector<1x16x128xf32>
    %3 = vector.shape_cast %2 : vector<1x16x128xf32> to vector<16x128xf32>
    %c2 = arith.constant 2 : index
    %c0_4 = arith.constant 0 : index
    %c0_5 = arith.constant 0 : index
    %4 = vector.load %arg2[%c2, %c0_4, %c0_5] : memref<3x16x128xf32, #tpu.memory_space<vmem>>, vector<1x16x128xf32>
    %5 = vector.shape_cast %4 : vector<1x16x128xf32> to vector<16x128xf32>
    %c0_6 = arith.constant 0 : index
    %6 = memref.load %arg1[%c0_6] : memref<9xf32, #tpu.memory_space<smem>>
    %7 = vector.broadcast %6 : f32 to vector<16x128xf32>
    %8 = arith.mulf %7, %1 : vector<16x128xf32>
    %c1_7 = arith.constant 1 : index
    %9 = memref.load %arg1[%c1_7] : memref<9xf32, #tpu.memory_space<smem>>
    %10 = vector.broadcast %9 : f32 to vector<16x128xf32>
    %11 = arith.mulf %10, %3 : vector<16x128xf32>
    %12 = arith.addf %8, %11 : vector<16x128xf32>
    %c2_8 = arith.constant 2 : index
    %13 = memref.load %arg1[%c2_8] : memref<9xf32, #tpu.memory_space<smem>>
    %14 = vector.broadcast %13 : f32 to vector<16x128xf32>
    %15 = arith.mulf %14, %5 : vector<16x128xf32>
    %16 = arith.addf %12, %15 : vector<16x128xf32>
    %c0_9 = arith.constant 0 : index
    %c0_10 = arith.constant 0 : index
    %c0_11 = arith.constant 0 : index
    %17 = vector.load %arg3[%c0_9, %c0_10, %c0_11] : memref<3x16x128xf32, #tpu.memory_space<vmem>>, vector<1x16x128xf32>
    %18 = vector.shape_cast %17 : vector<1x16x128xf32> to vector<16x128xf32>
    %19 = vector.shape_cast %16 : vector<16x128xf32> to vector<1x16x128xf32>
    tpu.vector_store %arg3[%c0_9, %c0_10, %c0_11], %19 {strides = array<i32>} : memref<3x16x128xf32, #tpu.memory_space<vmem>>, vector<1x16x128xf32>,
    %c3 = arith.constant 3 : index
    %20 = memref.load %arg1[%c3] : memref<9xf32, #tpu.memory_space<smem>>
    %21 = vector.broadcast %20 : f32 to vector<16x128xf32>
    %22 = arith.mulf %21, %1 : vector<16x128xf32>
    %c4 = arith.constant 4 : index
    %23 = memref.load %arg1[%c4] : memref<9xf32, #tpu.memory_space<smem>>
    %24 = vector.broadcast %23 : f32 to vector<16x128xf32>
    %25 = arith.mulf %24, %3 : vector<16x128xf32>
    %26 = arith.addf %22, %25 : vector<16x128xf32>
    %c5 = arith.constant 5 : index
    %27 = memref.load %arg1[%c5] : memref<9xf32, #tpu.memory_space<smem>>
    %28 = vector.broadcast %27 : f32 to vector<16x128xf32>
    %29 = arith.mulf %28, %5 : vector<16x128xf32>
    %30 = arith.addf %26, %29 : vector<16x128xf32>
    %c1_12 = arith.constant 1 : index
    %c0_13 = arith.constant 0 : index
    %c0_14 = arith.constant 0 : index
    %31 = vector.load %arg3[%c1_12, %c0_13, %c0_14] : memref<3x16x128xf32, #tpu.memory_space<vmem>>, vector<1x16x128xf32>
    %32 = vector.shape_cast %31 : vector<1x16x128xf32> to vector<16x128xf32>
    %33 = vector.shape_cast %30 : vector<16x128xf32> to vector<1x16x128xf32>
    tpu.vector_store %arg3[%c1_12, %c0_13, %c0_14], %33 {strides = array<i32>} : memref<3x16x128xf32, #tpu.memory_space<vmem>>, vector<1x16x128xf32>,
    %c6 = arith.constant 6 : index
    %34 = memref.load %arg1[%c6] : memref<9xf32, #tpu.memory_space<smem>>
    %35 = vector.broadcast %34 : f32 to vector<16x128xf32>
    %36 = arith.mulf %35, %1 : vector<16x128xf32>
    %c7 = arith.constant 7 : index
    %37 = memref.load %arg1[%c7] : memref<9xf32, #tpu.memory_space<smem>>
    %38 = vector.broadcast %37 : f32 to vector<16x128xf32>
    %39 = arith.mulf %38, %3 : vector<16x128xf32>
    %40 = arith.addf %36, %39 : vector<16x128xf32>
    %c8 = arith.constant 8 : index
    %41 = memref.load %arg1[%c8] : memref<9xf32, #tpu.memory_space<smem>>
    %42 = vector.broadcast %41 : f32 to vector<16x128xf32>
    %43 = arith.mulf %42, %5 : vector<16x128xf32>
    %44 = arith.addf %40, %43 : vector<16x128xf32>
    %c2_15 = arith.constant 2 : index
    %c0_16 = arith.constant 0 : index
    %c0_17 = arith.constant 0 : index
    %45 = vector.load %arg3[%c2_15, %c0_16, %c0_17] : memref<3x16x128xf32, #tpu.memory_space<vmem>>, vector<1x16x128xf32>
    %46 = vector.shape_cast %45 : vector<1x16x128xf32> to vector<16x128xf32>
    %47 = vector.shape_cast %44 : vector<16x128xf32> to vector<1x16x128xf32>
    tpu.vector_store %arg3[%c2_15, %c0_16, %c0_17], %47 {strides = array<i32>} : memref<3x16x128xf32, #tpu.memory_space<vmem>>, vector<1x16x128xf32>,
    return
  }
  func.func @transform_0(%arg0: i32) -> i32 {
    %c0_i32 = arith.constant 0 : i32
    %c0_i32_0 = arith.constant 0 : i32
    return %c0_i32 : i32
  }
  func.func @transform_1(%arg0: i32) -> (i32, i32, i32) {
    %c0_i32 = arith.constant 0 : i32
    %c0_i32_0 = arith.constant 0 : i32
    %c0_i32_1 = arith.constant 0 : i32
    return %c0_i32, %arg0, %c0_i32_0 : i32, i32, i32
  }
  func.func @transform_2(%arg0: i32) -> (i32, i32, i32) {
    %c0_i32 = arith.constant 0 : i32
    %c0_i32_0 = arith.constant 0 : i32
    %c0_i32_1 = arith.constant 0 : i32
    return %c0_i32, %arg0, %c0_i32_0 : i32, i32, i32
  }
}

</mosaic_0001>

<bundles_post_ra>
// kernel: tpu_custom_call.1
= control target key start
LH: loop header
LB: loop body
LE: loop exit
PB: predicated region body
PF: predicated region fallthrough
CT: control target
= control target key end

     0   :  { %7 = vsyncpa [#allocation5], 0  ;;  %s759_s0 = inlined_call_operand.hbm [shape: f32[9], index: 0, kind: input, shape index: {}]   ;;  %s760_s1 = inlined_call_operand.hbm [shape: f32[3,40,128], index: 1, kind: input, shape index: {}]   ;;  %s761_s2 = inlined_call_operand.hbm [shape: f32[3,40,128], index: 2, kind: output, shape index: {}]  }
   0x1   :  { %8 = vsyncpa [#allocation3], 0 }
   0x2   :  { %10 = vsyncpa [#allocation3 + $0x1], 0 }
   0x3   :  { %11 = vsyncpa [#allocation4], 0 }
   0x4   :  { %13 = vsyncpa [#allocation4 + $0x1], 0  ;;  %s602_s9 = smov 0   ;;  %s604_s10 = smov 0  }
   0x5   :  { %s606_s11 = smov 0   ;;  %s608_s12 = smov 0  }
   0x6 LB: > { %s623_s13 = sadd.s32 4294967295, %s573_s12   ;;  %s415_s14 = sadd.s32 4294967294, %s573_s12   ;;  %s573_s12 = sphi %s608_s12, %s770_s12   ;;  %s569_s11 = sphi %s606_s11, %s769_s11   ;;  %s565_s10 = sphi %s604_s10, %s768_s10   ;;  %s561_s9 = sphi %s602_s9, %s767_s9  }
   0x7   : > { %s627_s15 = sadd.s32 1, %s573_s12   ;;  %s47_s16 = sadd.s32 1, %s569_s11 }
   0x8   : > { %s44_s17 = ssub.s32 %s573_s12, %s627_s15  ;;  %p54_p0 = scmp.ne.s32.totalorder %s569_s11, %s565_s10 }
   0x9   : > { %p45_p1 = scmp.eq.s32.totalorder %s44_s17, 0  ;;  %p55_p2 = scmp.eq.s32.totalorder %s573_s12, 0 }
   0xa   : > { %p60_p3 = scmp.ne.s32.totalorder %s565_s10, %s561_s9  ;;  %p61_p4 = scmp.eq.s32.totalorder %s623_s13, 0 }
   0xb   : > { %s639_s18 = scalar_select %p45_p1, %s569_s11, %s47_s16  }
   0xc   : > { %p641_p5 = por %p55_p2, %p54_p0  ;;  %p647_p6 = por %p61_p4, %p60_p3 }
   0xd   : > { %p84_p7 = scmp.eq.s32.totalorder %s623_s13, 2  ;;  %p90_p8 = scmp.eq.s32.totalorder %s415_s14, 2 }
   0xe   : > { %p416_p9 = scmp.ge.s32.totalorder %s573_s12, 1  ;;  %p97_p10 = scmp.lt.s32.totalorder %s573_s12, 4 }
   0xf   : > { %p654_p11 = por %p84_p7, %p54_p0  ;;  %p658_p12 = por %p90_p8, %p60_p3 }
  0x10   : > { %p662_p13 = pnand %p416_p9, %p97_p10  ;;  %s518_s26 = scalar_lea.hbm %s759_s0, 16 }
  0x11   : > { %p519_p0 = scmp.ne.s32.totalorder %s759_s0, %s518_s26  ;;  %p525_p9 = scmp.lt.u32.totalorder %s518_s26, %s759_s0 }
  0x12   : > { %p463_p1 = pneg %p662_p13 }
  0x14   : > { %p464_p2 = pnand %p463_p1, %p61_p4 }
  0x16   : > { %p520_p3 = pneg %p464_p2 }
  0x18   : > { %p521_p7 = pnand %p520_p3, %p519_p0 }
  0x1a   : > { %p522_p8 = pneg %p521_p7 }
  0x1c   : > { %p527_p10 = pnand %p525_p9, %p522_p8 }
  0x1e   : > { %530 = shalt.err (!%p527_p10)
}
  0x1f   : > { %s575_s3 = smov [#allocation2]   ;;  %p418_p1 = scmp.ge.s32.totalorder %s573_s12, 3 }
  0x20   : > { %466 = dma.hbm_to_smem (!%p464_p2), %s759_s0, 16, %s575_s3, [#allocation5]  }
  0x21   : > { %115 = sbr.rel (%p418_p1) target bundleno = 65 (0x41), region = 20 }
  0x28   : > { %118 = sbr.rel (!%p641_p5) target bundleno = 65 (0x41), region = 24 }
  0x2f   : > { %s119_s6 = sand.u32 1, %s569_s11   ;;  %s419_s7 = sshll.u32 %s573_s12, 1 }
  0x30   : > { %s455_s8 = smul.u32 48, %s119_s6  ;;  %s125_s14 = ssub.s32 5, %s419_s7 }
  0x31   : > { %p126_p0 = scmp.lt.s32.totalorder %s125_s14, 2  ;;  %s120_s24 = scalar_lea.sflag [#allocation3], %s119_s6 }
  0x32   : > { %s123_s25 = scalar_lea.vmem [#allocation6], %s455_s8 }
  0x33   : > { %s772_s14 = smov (!%p126_p0, %s125_s14), 2 }
  0x34   : > { %s128_s16 = smul.u32 384, %s772_s14 }
  0x36   : > { %s130_s17 = ssub.s32 768, %s128_s16 }
  0x37   : > { %131 = vsyncadd %s120_s24, %s130_s17  ;;  %p420_p2 = scmp.ne.s32.totalorder %s128_s16, 0  ;;  %s453_s26 = sshll.u32 %s573_s12, 8 }
  0x38   : > { %s134_s19 = scalar_lea.hbm %s760_s1, %s453_s26  ;;  %s141_s29 = sld [smem:[#allocation0]]  }
  0x39   : > { %s149_s30 = sshll.u32 %s123_s25, 4  ;;  %s576_s3 = smov 640   ;;  %s150_s30 = int_to_ptr.vmem [resolvable:$true] %s149_s30 }
  0x3a   : > { %156 = sst [smem:[#allocation9]] %s576_s3  ;;  %s577_s4 = smov 256  }
  0x3b   : > { %160 = sst [smem:[#allocation9 + $0x2]] %s772_s14  ;;  %s578_s5 = smov 128  }
  0x3c   : > { %158 = sst [smem:[#allocation9 + $0x1]] %s577_s4  ;;  %s579_s8 = smov 8  }
  0x3d   : > { %162 = sst [smem:[#allocation9 + $0x3]] %s578_s5  ;;  %s580_s17 = smov [#allocation8]  }
  0x3e   : > { %s424_s6 = sshll.u32 %s141_s29, 26  ;;  %164 = sst [smem:[#allocation9 + $0x4]] %s578_s5 }
  0x3f   : > { %s425_s7 = sadd.s32 134217728, %s424_s6  ;;  %166 = sst [smem:[#allocation9 + $0x5]] %s579_s8 }
  0x40   : > { %168 = dma.general (%p420_p2), %s134_s19, %s128_s16, %s150_s30, %s120_s24, %s580_s17, [#allocation9], %s425_s7, 0  }
  0x41 PF: > { %174 = sbr.rel (%p662_p13) target bundleno = 119 (0x77), region = 28 }
  0x48   : > { %548 = dma.done.wait (%p61_p4), [#allocation5], 16  }
  0x49   : > { %550 = vsyncadd (%p61_p4), [#allocation5], 4294967280  ;;  %s699_s14 = sand.u32 1, %s565_s10  }
  0x4a   : > { %s456_s25 = smul.u32 48, %s699_s14  ;;  %s181_s16 = scalar_lea.sflag [#allocation3], %s699_s14 }
  0x4c   : > { %s184_s24 = scalar_lea.vmem [#allocation6], %s456_s25 }
  0x4d   : > { %552 = dma.done.wait (%p647_p6), %s181_s16, 768  }
  0x4e   : > { %554 = vsyncadd (%p647_p6), %s181_s16, 4294966528 }
  0x4f   : > { %189 = sfence }
  0x50   : > { %s224_s23 = sld [smem:[#allocation2]]  ;;  %s433_s26 = sld [smem:[#allocation2 + $0x1]]  ;;  %v216_v0 = vld [vmem:[%s184_s24] sm:$0xff]  ;;  %v429_v1 = vld [vmem:[%s184_s24 + $0x10] sm:$0xff]  ;;  %v217_v2 = vld [vmem:[%s184_s24 + $0x8] sm:$0xff] }
  0x51   : > { %s434_s27 = sld [smem:[#allocation2 + $0x2]]  ;;  %s435_s28 = sld [smem:[#allocation2 + $0x3]]  ;;  %v431_v3 = vld [vmem:[%s184_s24 + $0x20] sm:$0xff]  ;;  %v430_v4 = vld [vmem:[%s184_s24 + $0x18] sm:$0xff]  ;;  %v432_v5 = vld [vmem:[%s184_s24 + $0x28] sm:$0xff] }
  0x52   : > { %s436_s19 = sld [smem:[#allocation2 + $0x4]]  ;;  %s437_s29 = sld [smem:[#allocation2 + $0x5]] }
  0x53   : > { %s709_s30 = sld [smem:[#allocation2 + $0x6]]  ;;  %s711_s3 = sld [smem:[#allocation2 + $0x7]] }
  0x54   : > { %s713_s20 = sld [smem:[#allocation2 + $0x8]]  ;;  %s720_s4 = scalar_lea.vmem [#allocation7], %s456_s25 }
  0x55   : > { %s281_s5 = scalar_lea.sflag [#allocation4], %s699_s14 }
  0x56   : > { %v225_v6 = vstv %s224_s23  ;;  %v229_v8 = vstv %s433_s26 }
  0x57   : > { %v226_v7 = vmul.f32 %v225_v6, %v216_v0  ;;  %v235_v9 = vstv %s434_s27  ;;  %v227_v10 = vmul.f32 %v225_v6, %v217_v2  ;;  %v230_v11 = vmul.f32 %v429_v1, %v229_v8 }
  0x58   : > { %v236_v12 = vmul.f32 %v431_v3, %v235_v9  ;;  %v231_v13 = vmul.f32 %v430_v4, %v229_v8  ;;  %v237_v14 = vmul.f32 %v432_v5, %v235_v9  ;;  %v243_v15 = vstv %s435_s28 }
  0x59   : > { %v247_v16 = vstv %s436_s19  ;;  %v253_v17 = vstv %s437_s29  ;;  %v262_v18 = vstv %s709_s30  ;;  %v232_v19 = vadd.f32 %v230_v11, %v226_v7 }
  0x5a   : > { %v233_v20 = vadd.f32 %v231_v13, %v227_v10  ;;  %v244_v21 = vmul.f32 %v243_v15, %v216_v0  ;;  %v248_v22 = vmul.f32 %v429_v1, %v247_v16  ;;  %v254_v23 = vmul.f32 %v431_v3, %v253_v17 }
  0x5b   : > { %v245_v24 = vmul.f32 %v243_v15, %v217_v2  ;;  %v249_v25 = vmul.f32 %v430_v4, %v247_v16  ;;  %v255_v26 = vmul.f32 %v432_v5, %v253_v17  ;;  %v238_v27 = vadd.f32 %v236_v12, %v232_v19 }
  0x5c   : > { %v239_v28 = vadd.f32 %v237_v14, %v233_v20  ;;  %v250_v29 = vadd.f32 %v248_v22, %v244_v21  ;;  %v263_v30 = vmul.f32 %v262_v18, %v216_v0  ;;  %v266_v32 = vstv %s711_s3 }
  0x5d   : > { %v251_v31 = vadd.f32 %v249_v25, %v245_v24  ;;  %v272_v33 = vstv %s713_s20  ;;  %v264_v34 = vmul.f32 %v262_v18, %v217_v2  ;;  %240 = vst [vmem:[%s720_s4] sm:$0xff] %v238_v27  ;;  %v267_v36 = vmul.f32 %v429_v1, %v266_v32 }
  0x5e   : > { %241 = vst [vmem:[%s720_s4 + $0x8] sm:$0xff] %v239_v28  ;;  %v256_v35 = vadd.f32 %v254_v23, %v250_v29  ;;  %v273_v37 = vmul.f32 %v431_v3, %v272_v33  ;;  %v268_v38 = vmul.f32 %v430_v4, %v266_v32  ;;  %v274_v40 = vmul.f32 %v432_v5, %v272_v33  ;;  %287 = sbr.rel (!%p654_p11) target bundleno = 119 (0x77), region = 40 }
  0x5f   : > { %v257_v39 = vadd.f32 %v255_v26, %v251_v31  ;;  %v269_v41 = vadd.f32 %v267_v36, %v263_v30 }
  0x60   : > { %438 = vst [vmem:[%s720_s4 + $0x10] sm:$0xff] %v256_v35  ;;  %v270_v42 = vadd.f32 %v268_v38, %v264_v34 }
  0x61   : > { %439 = vst [vmem:[%s720_s4 + $0x18] sm:$0xff] %v257_v39  ;;  %v275_v43 = vadd.f32 %v273_v37, %v269_v41 }
  0x62   : > { %v276_v44 = vadd.f32 %v274_v40, %v270_v42 }
  0x63   : > { %443 = vst [vmem:[%s720_s4 + $0x20] sm:$0xff] %v275_v43 }
  0x64   : > { %444 = vst [vmem:[%s720_s4 + $0x28] sm:$0xff] %v276_v44 }
  0x65   : > { %s445_s6 = sshll.u32 %s623_s13, 1 }
  0x66   : > { %s289_s7 = ssub.s32 5, %s445_s6 }
  0x67   : > { %p290_p4 = scmp.lt.s32.totalorder %s289_s7, 2 }
  0x69   : > { %s774_s7 = smov (!%p290_p4, %s289_s7), 2 }
  0x6a   : > { %s292_s8 = smul.u32 384, %s774_s7 }
  0x6c   : > { %s294_s17 = ssub.s32 768, %s292_s8 }
  0x6d   : > { %295 = vsyncadd %s281_s5, %s294_s17  ;;  %p446_p5 = scmp.ne.s32.totalorder %s292_s8, 0  ;;  %s454_s25 = sshll.u32 %s623_s13, 8 }
  0x6e   : > { %s298_s21 = scalar_lea.hbm %s761_s2, %s454_s25  ;;  %s317_s23 = sshll.u32 %s720_s4, 4  ;;  %s318_s23 = int_to_ptr.vmem [resolvable:$true] %s317_s23 }
  0x6f   : > { %s581_s26 = smov 256   ;;  %s582_s27 = smov 640  }
  0x70   : > { %324 = sst [smem:[#allocation11]] %s581_s26  ;;  %s583_s28 = smov 128  }
  0x71   : > { %326 = sst [smem:[#allocation11 + $0x1]] %s582_s27  ;;  %s584_s19 = smov 8  }
  0x72   : > { %328 = sst [smem:[#allocation11 + $0x2]] %s774_s7  ;;  %s585_s29 = smov [#allocation10]  }
  0x73   : > { %330 = sst [smem:[#allocation11 + $0x3]] %s583_s28  ;;  %s586_s30 = smov 0  }
  0x74   : > { %332 = sst [smem:[#allocation11 + $0x4]] %s583_s28 }
  0x75   : > { %334 = sst [smem:[#allocation11 + $0x5]] %s584_s19 }
  0x76   : > { %336 = dma.general (%p446_p5), %s318_s23, %s292_s8, %s298_s21, %s281_s5, %s585_s29, [#allocation11], %s586_s30, 0  }
  0x77 PF: > { %p473_p6 = scmp.ge.s32.totalorder %s573_s12, 2  ;;  %s345_s13 = sand.u32 1, %s561_s9  }
  0x78   : > { %s346_s3 = scalar_lea.sflag [#allocation4], %s345_s13 }
  0x79   : > { %p468_p11 = pnand %p473_p6, %p658_p12 }
  0x7b   : > { %556 = dma.done.wait (!%p468_p11), %s346_s3, 768  }
  0x7c   : > { %558 = vsyncadd (!%p468_p11), %s346_s3, 4294966528  ;;  %p16_p13 = scmp.ge.s32.totalorder %s627_s15, 5   ;;  %s767_s9 = smov %s565_s10 }
  0x7d   : > { %s768_s10 = smov %s569_s11  ;;  %s769_s11 = smov %s639_s18 }
  0x7e   : > { %s770_s12 = smov %s627_s15  ;;  %18 = sbr.rel (!%p16_p13) target bundleno = 6 (0x6), region = 92 }
  0x85   :  { %351 = vsyncpa [#allocation3], 1 }
  0x86   :  { %353 = vsyncpa [#allocation3 + $0x1], 1 }
  0x87   :  { %354 = vsyncpa [#allocation4], 1 }
  0x88   :  { %356 = vsyncpa [#allocation4 + $0x1], 1 }
  0x89   :  { %357 = vsyncpa [#allocation5], 1 }
  0x8a   :  { %359 = vsyncpa [#allocation5 + $0x1], 1 }

</bundles_post_ra>
